<compile_context>
chip_gen: v7x
topology: tpu7x:2x2x1
jax: 0.10.0
libtpu: 0.0.40
codegen_flags: <defaults>
</compile_context>

<pallas_src>
import math
from functools import partial

import jax
import jax.numpy as jnp
from jax.experimental import pallas as pl
from jax.experimental.pallas import tpu as pltpu


# ----------------------------- schedule (glue) -----------------------------

def sigmoid_beta_schedule(timesteps, start=-3.0, end=3.0, tau=1.0):
    steps = timesteps + 1
    t = jnp.linspace(0.0, float(timesteps), steps, dtype=jnp.float32) / timesteps
    v_start = jax.nn.sigmoid(jnp.float32(start / tau))
    v_end = jax.nn.sigmoid(jnp.float32(end / tau))
    alphas_cumprod = (-jax.nn.sigmoid((t * (end - start) + start) / tau) + v_end) / (
        v_end - v_start
    )
    alphas_cumprod = alphas_cumprod / alphas_cumprod[0]
    betas = 1.0 - (alphas_cumprod[1:] / alphas_cumprod[:-1])
    return jnp.clip(betas, 0.0, 0.999)


def make_diffusion_buffers(timesteps):
    betas = sigmoid_beta_schedule(timesteps)
    alphas = 1.0 - betas
    alphas_cumprod = jnp.cumprod(alphas, axis=0)
    sqrt_alphas_cumprod = jnp.sqrt(alphas_cumprod)
    sqrt_one_minus_alphas_cumprod = jnp.sqrt(1.0 - alphas_cumprod)
    snr = alphas_cumprod / (1.0 - alphas_cumprod)
    # objective == 'pred_v', min_snr_loss_weight == False
    loss_weight = snr / (snr + 1.0)
    return (
        sqrt_alphas_cumprod.astype(jnp.float32),
        sqrt_one_minus_alphas_cumprod.astype(jnp.float32),
        loss_weight.astype(jnp.float32),
    )


def sinusoidal_time_emb(t, dim):
    half = dim // 2
    freqs = jnp.exp(-math.log(10000.0) * jnp.arange(half, dtype=jnp.float32) / (half - 1))
    args = t.astype(jnp.float32)[:, None] * freqs[None, :]
    return jnp.concatenate([jnp.sin(args), jnp.cos(args)], axis=-1)  # (B, dim)


# ------------------------------ Pallas kernel ------------------------------

def p_losses_kernel(img_ref, noise_ref, sacp_ref, s1m_ref, lw_ref,
                    temb_ref, w_ref, bias_ref, loss_ref, *, inv_denom):
    """Grid = (batch tiles, spatial tiles); accumulates the final scalar loss.

    img_ref   : VMEM (BT, C, S)   raw image chunk in [0, 1]   (lane axis = S)
    noise_ref : VMEM (BT, C, S)
    sacp_ref  : VMEM (BT, 1, 1)   sqrt_alphas_cumprod[t]       (per-batch)
    s1m_ref   : VMEM (BT, 1, 1)   sqrt_one_minus_alphas_cumprod[t]
    lw_ref    : VMEM (BT, 1, 1)   loss_weight[t]
    temb_ref  : VMEM (BT, C, 1)   per-batch time-embedding bias for the model
    w_ref     : VMEM (C_in, C_out, 1)  1x1-conv weight of the synthetic model
    bias_ref  : VMEM (1, C, 1)    conv bias
    loss_ref  : VMEM (1, 1)       resident accumulator -> final scalar loss
    """
    bi = pl.program_id(0)
    sj = pl.program_id(1)
    nb = pl.num_programs(0)
    ns = pl.num_programs(1)

    @pl.when(jnp.logical_and(bi == 0, sj == 0))
    def _init():
        loss_ref[...] = jnp.zeros_like(loss_ref)

    # normalize_to_neg_one_to_one
    x0 = img_ref[...] * 2.0 - 1.0                    # (BT, C, S)
    noise = noise_ref[...]                           # (BT, C, S)

    sacp = sacp_ref[...]                             # (BT, 1, 1) broadcast
    s1m = s1m_ref[...]

    # q_sample
    x_t = sacp * x0 + s1m * noise

    # predict_v target (objective == 'pred_v')
    v = sacp * noise - s1m * x0

    # synthetic denoiser: 1x1 conv as unrolled VPU broadcast-FMAs over C_in
    # (C is tiny/static -> keep it off the MXU), + bias + time embedding.
    w_all = w_ref[...]                               # (C_in, C_out, 1)
    out = temb_ref[...] + bias_ref[...]              # (BT, C_out, 1)
    c_in = w_all.shape[0]
    for ci in range(c_in):                           # unrolled at trace time
        out = out + w_all[ci][None, :, :] * x_t[:, ci:ci + 1, :]
    # out: (BT, C_out, S)

    diff = out - v
    wsq = diff * diff * lw_ref[...]                  # per-batch loss_weight
    loss_ref[...] += jnp.sum(wsq)                    # partial weighted SSE

    @pl.when(jnp.logical_and(bi == nb - 1, sj == ns - 1))
    def _finalize():
        # mean over (c, h, w) per image and mean over batch, fused:
        # inv_denom = 1 / (B * C * H * W)  (full sizes, independent of tiling)
        loss_ref[...] = loss_ref[...] * inv_denom


# ------------------------------- wrapper ----------------------------------

def _pick_tiles(B, C, HW, elem_bytes=4, block_budget=2 << 20):
    """Pick (batch_tile, spatial_tile) so streamed blocks stay well inside the
    scoped-VMEM budget on every generation (v5e 16 MiB default, v7x 64 MiB)."""
    if C * HW * elem_bytes <= block_budget or HW % 128 != 0:
        s_tile = HW
    else:
        s_tile = 128
        for m in range(HW // 128, 0, -1):
            cand = m * 128
            if HW % cand == 0 and C * cand * elem_bytes <= block_budget:
                s_tile = cand
                break
    b_tile = 1
    for d in range(1, B + 1):
        if B % d == 0 and d * C * s_tile * elem_bytes <= block_budget:
            b_tile = d
    return b_tile, s_tile


def gaussian_diffusion_forward(img_nchw, t, noise_nchw, w, bias, temb,
                               sqrt_acp, sqrt_1m_acp, loss_weight):
    B, C, H, W = img_nchw.shape
    HW = H * W

    # NCHW -> (B, C, H*W): a free reshape (no transpose / extra HBM pass);
    # the spatial axis (multiple of 128) maps to lanes.
    x = img_nchw.reshape(B, C, HW).astype(jnp.float32)
    n = noise_nchw.reshape(B, C, HW).astype(jnp.float32)

    # extract(): per-batch schedule coefficients as (B,1,1) broadcast columns.
    sacp = sqrt_acp[t].reshape(B, 1, 1).astype(jnp.float32)
    s1m = sqrt_1m_acp[t].reshape(B, 1, 1).astype(jnp.float32)
    lw = loss_weight[t].reshape(B, 1, 1).astype(jnp.float32)

    temb3 = temb.reshape(B, C, 1).astype(jnp.float32)
    w3 = w.reshape(C, C, 1).astype(jnp.float32)      # [c_in, c_out, 1]
    bias3 = bias.reshape(1, C, 1).astype(jnp.float32)

    b_tile, s_tile = _pick_tiles(B, C, HW)
    nb, ns = B // b_tile, HW // s_tile

    out = pl.pallas_call(
        partial(p_losses_kernel, inv_denom=1.0 / float(B * C * HW)),
        out_shape=jax.ShapeDtypeStruct((1, 1), jnp.float32),
        grid=(nb, ns),
        in_specs=[
            pl.BlockSpec((b_tile, C, s_tile), lambda i, j: (i, 0, j)),   # img
            pl.BlockSpec((b_tile, C, s_tile), lambda i, j: (i, 0, j)),   # noise
            pl.BlockSpec((b_tile, 1, 1), lambda i, j: (i, 0, 0)),        # sqrt_acp[t]
            pl.BlockSpec((b_tile, 1, 1), lambda i, j: (i, 0, 0)),        # sqrt_1m_acp[t]
            pl.BlockSpec((b_tile, 1, 1), lambda i, j: (i, 0, 0)),        # loss_weight[t]
            pl.BlockSpec((b_tile, C, 1), lambda i, j: (i, 0, 0)),        # temb
            pl.BlockSpec((C, C, 1), lambda i, j: (0, 0, 0)),             # w
            pl.BlockSpec((1, C, 1), lambda i, j: (0, 0, 0)),             # bias
        ],
        out_specs=pl.BlockSpec((1, 1), lambda i, j: (0, 0)),
        compiler_params=pltpu.CompilerParams(
            # Both axes accumulate into the resident output -> "arbitrary".
            dimension_semantics=("arbitrary", "arbitrary"),
        ),
    )(x, n, sacp, s1m, lw, temb3, w3, bias3)

    return out[0, 0]


# --------------------------------- main ------------------------------------

if __name__ == "__main__":
    B, C, H, W = 2, 4, 16, 16
    TIMESTEPS = 100
    TEMB_DIM = 8

    key = jax.random.PRNGKey(0)
    k_img, k_noise, k_t, k_w, k_b, k_wt = jax.random.split(key, 6)

    # inputs: image in [0, 1] (auto_normalize=True path), per-batch timesteps
    img = jax.random.uniform(k_img, (B, C, H, W), dtype=jnp.float32)
    noise = jax.random.normal(k_noise, (B, C, H, W), dtype=jnp.float32)
    t = jax.random.randint(k_t, (B,), 0, TIMESTEPS)

    # deterministic synthetic model parameters (model.channels == model.out_dim == C)
    # TODO(synk): the real U-Net denoiser is replaced by a 1x1 conv + bias + time-emb.
    w = jax.random.normal(k_w, (C, C), dtype=jnp.float32) * 0.2
    bias = jax.random.normal(k_b, (C,), dtype=jnp.float32) * 0.1
    w_temb = jax.random.normal(k_wt, (TEMB_DIM, C), dtype=jnp.float32) * 0.1
    temb = sinusoidal_time_emb(t, TEMB_DIM) @ w_temb  # (B, C)

    sqrt_acp, sqrt_1m_acp, loss_weight = make_diffusion_buffers(TIMESTEPS)

    loss = gaussian_diffusion_forward(
        img, t, noise, w, bias, temb, sqrt_acp, sqrt_1m_acp, loss_weight
    )
    loss = jax.block_until_ready(loss)

    # plain-JAX reference for the same forward pass
    x0_r = img * 2.0 - 1.0
    sa_r = sqrt_acp[t][:, None, None, None]
    s1_r = sqrt_1m_acp[t][:, None, None, None]
    xt_r = sa_r * x0_r + s1_r * noise
    out_r = (jnp.einsum("bchw,cd->bdhw", xt_r, w)
             + bias[None, :, None, None] + temb[:, :, None, None])
    v_r = sa_r * noise - s1_r * x0_r
    per_b = jnp.mean((out_r - v_r) ** 2, axis=(1, 2, 3)) * loss_weight[t]
    ref = jnp.mean(per_b)

    assert loss.shape == () and jnp.isfinite(loss)
    assert abs(float(loss) - float(ref)) <= 2e-3 * max(1.0, abs(float(ref))), (
        float(loss), float(ref))
    print("KERNEL_OK")
</pallas_src>

<mosaic_0001>
module attributes {stable_mosaic.version = 11 : i64} {
  func.func @p_losses_kernel(%arg0: i32, %arg1: i32, %arg2: memref<2x4x256xf32, #tpu.memory_space<vmem>>, %arg3: memref<2x4x256xf32, #tpu.memory_space<vmem>>, %arg4: memref<2x1x1xf32, #tpu.memory_space<vmem>>, %arg5: memref<2x1x1xf32, #tpu.memory_space<vmem>>, %arg6: memref<2x1x1xf32, #tpu.memory_space<vmem>>, %arg7: memref<2x4x1xf32, #tpu.memory_space<vmem>>, %arg8: memref<4x4x1xf32, #tpu.memory_space<vmem>>, %arg9: memref<1x4x1xf32, #tpu.memory_space<vmem>>, %arg10: memref<1x1xf32, #tpu.memory_space<vmem>>) attributes {dimension_semantics = [#tpu.dimension_semantics<arbitrary>, #tpu.dimension_semantics<arbitrary>], iteration_bounds = array<i64: 1, 1>, scalar_prefetch = 0 : i64, scratch_operands = 0 : i64, tpu.core_type = #tpu.core_type<tc>, window_params = [{transform_indices = @transform_0, window_bounds = array<i64: 2, 4, 256>}, {transform_indices = @transform_1, window_bounds = array<i64: 2, 4, 256>}, {transform_indices = @transform_2, window_bounds = array<i64: 2, 1, 1>}, {transform_indices = @transform_3, window_bounds = array<i64: 2, 1, 1>}, {transform_indices = @transform_4, window_bounds = array<i64: 2, 1, 1>}, {transform_indices = @transform_5, window_bounds = array<i64: 2, 4, 1>}, {pipeline_mode = #tpu.pipeline_mode<synchronous>, transform_indices = @transform_6, window_bounds = array<i64: 4, 4, 1>}, {pipeline_mode = #tpu.pipeline_mode<synchronous>, transform_indices = @transform_7, window_bounds = array<i64: 1, 4, 1>}, {pipeline_mode = #tpu.pipeline_mode<synchronous>, transform_indices = @transform_8, window_bounds = array<i64: 1, 1>}]} {
    %c0_i32 = arith.constant 0 : i32
    %0 = arith.cmpi eq, %arg0, %c0_i32 : i32
    %c0_i32_0 = arith.constant 0 : i32
    %1 = arith.cmpi eq, %arg1, %c0_i32_0 : i32
    %2 = arith.andi %0, %1 : i1
    %3 = arith.extui %2 : i1 to i32
    %c0_i32_1 = arith.constant 0 : i32
    %4 = arith.cmpi ne, %3, %c0_i32_1 : i32
    scf.if %4 {
      %cst_34 = arith.constant 0.000000e+00 : f32
      %79 = vector.broadcast %cst_34 : f32 to vector<1x1xf32>
      %c0_35 = arith.constant 0 : index
      %c0_36 = arith.constant 0 : index
      %80 = vector.load %arg10[%c0_35, %c0_36] : memref<1x1xf32, #tpu.memory_space<vmem>>, vector<1x1xf32>
      tpu.vector_store %arg10[%c0_35, %c0_36], %79 {strides = array<i32>} : memref<1x1xf32, #tpu.memory_space<vmem>>, vector<1x1xf32>,
    } else {
    }
    %c0 = arith.constant 0 : index
    %c0_2 = arith.constant 0 : index
    %c0_3 = arith.constant 0 : index
    %5 = vector.load %arg2[%c0, %c0_2, %c0_3] : memref<2x4x256xf32, #tpu.memory_space<vmem>>, vector<2x4x256xf32>
    %cst = arith.constant 2.000000e+00 : f32
    %6 = vector.broadcast %cst : f32 to vector<2x4x256xf32>
    %7 = arith.mulf %5, %6 : vector<2x4x256xf32>
    %cst_4 = arith.constant 1.000000e+00 : f32
    %8 = vector.broadcast %cst_4 : f32 to vector<2x4x256xf32>
    %9 = arith.subf %7, %8 : vector<2x4x256xf32>
    %c0_5 = arith.constant 0 : index
    %c0_6 = arith.constant 0 : index
    %c0_7 = arith.constant 0 : index
    %10 = vector.load %arg3[%c0_5, %c0_6, %c0_7] : memref<2x4x256xf32, #tpu.memory_space<vmem>>, vector<2x4x256xf32>
    %c0_8 = arith.constant 0 : index
    %c0_9 = arith.constant 0 : index
    %c0_10 = arith.constant 0 : index
    %11 = vector.load %arg4[%c0_8, %c0_9, %c0_10] : memref<2x1x1xf32, #tpu.memory_space<vmem>>, vector<2x1x1xf32>
    %c0_11 = arith.constant 0 : index
    %c0_12 = arith.constant 0 : index
    %c0_13 = arith.constant 0 : index
    %12 = vector.load %arg5[%c0_11, %c0_12, %c0_13] : memref<2x1x1xf32, #tpu.memory_space<vmem>>, vector<2x1x1xf32>
    %13 = vector.broadcast %11 : vector<2x1x1xf32> to vector<2x4x256xf32>
    %14 = arith.mulf %13, %9 : vector<2x4x256xf32>
    %15 = vector.broadcast %12 : vector<2x1x1xf32> to vector<2x4x256xf32>
    %16 = arith.mulf %15, %10 : vector<2x4x256xf32>
    %17 = arith.addf %14, %16 : vector<2x4x256xf32>
    %18 = vector.broadcast %11 : vector<2x1x1xf32> to vector<2x4x256xf32>
    %19 = arith.mulf %18, %10 : vector<2x4x256xf32>
    %20 = vector.broadcast %12 : vector<2x1x1xf32> to vector<2x4x256xf32>
    %21 = arith.mulf %20, %9 : vector<2x4x256xf32>
    %22 = arith.subf %19, %21 : vector<2x4x256xf32>
    %c0_14 = arith.constant 0 : index
    %c0_15 = arith.constant 0 : index
    %c0_16 = arith.constant 0 : index
    %23 = vector.load %arg8[%c0_14, %c0_15, %c0_16] : memref<4x4x1xf32, #tpu.memory_space<vmem>>, vector<4x4x1xf32>
    %c0_17 = arith.constant 0 : index
    %c0_18 = arith.constant 0 : index
    %c0_19 = arith.constant 0 : index
    %24 = vector.load %arg7[%c0_17, %c0_18, %c0_19] : memref<2x4x1xf32, #tpu.memory_space<vmem>>, vector<2x4x1xf32>
    %c0_20 = arith.constant 0 : index
    %c0_21 = arith.constant 0 : index
    %c0_22 = arith.constant 0 : index
    %25 = vector.load %arg9[%c0_20, %c0_21, %c0_22] : memref<1x4x1xf32, #tpu.memory_space<vmem>>, vector<1x4x1xf32>
    %26 = vector.broadcast %25 : vector<1x4x1xf32> to vector<2x4x1xf32>
    %27 = arith.addf %24, %26 : vector<2x4x1xf32>
    %28 = vector.extract_strided_slice %23 {offsets = [0, 0, 0], sizes = [1, 4, 1], strides = [1, 1, 1]} : vector<4x4x1xf32> to vector<1x4x1xf32>
    %29 = vector.shape_cast %28 : vector<1x4x1xf32> to vector<4x1xf32>
    %30 = vector.shape_cast %29 : vector<4x1xf32> to vector<1x4x1xf32>
    %31 = vector.extract_strided_slice %17 {offsets = [0, 0, 0], sizes = [2, 1, 256], strides = [1, 1, 1]} : vector<2x4x256xf32> to vector<2x1x256xf32>
    %32 = vector.broadcast %30 : vector<1x4x1xf32> to vector<2x4x256xf32>
    %33 = vector.broadcast %31 : vector<2x1x256xf32> to vector<2x4x256xf32>
    %34 = arith.mulf %32, %33 : vector<2x4x256xf32>
    %35 = vector.broadcast %27 : vector<2x4x1xf32> to vector<2x4x256xf32>
    %36 = arith.addf %35, %34 : vector<2x4x256xf32>
    %37 = vector.extract_strided_slice %23 {offsets = [1, 0, 0], sizes = [1, 4, 1], strides = [1, 1, 1]} : vector<4x4x1xf32> to vector<1x4x1xf32>
    %38 = vector.shape_cast %37 : vector<1x4x1xf32> to vector<4x1xf32>
    %39 = vector.shape_cast %38 : vector<4x1xf32> to vector<1x4x1xf32>
    %40 = vector.extract_strided_slice %17 {offsets = [0, 1, 0], sizes = [2, 1, 256], strides = [1, 1, 1]} : vector<2x4x256xf32> to vector<2x1x256xf32>
    %41 = vector.broadcast %39 : vector<1x4x1xf32> to vector<2x4x256xf32>
    %42 = vector.broadcast %40 : vector<2x1x256xf32> to vector<2x4x256xf32>
    %43 = arith.mulf %41, %42 : vector<2x4x256xf32>
    %44 = arith.addf %36, %43 : vector<2x4x256xf32>
    %45 = vector.extract_strided_slice %23 {offsets = [2, 0, 0], sizes = [1, 4, 1], strides = [1, 1, 1]} : vector<4x4x1xf32> to vector<1x4x1xf32>
    %46 = vector.shape_cast %45 : vector<1x4x1xf32> to vector<4x1xf32>
    %47 = vector.shape_cast %46 : vector<4x1xf32> to vector<1x4x1xf32>
    %48 = vector.extract_strided_slice %17 {offsets = [0, 2, 0], sizes = [2, 1, 256], strides = [1, 1, 1]} : vector<2x4x256xf32> to vector<2x1x256xf32>
    %49 = vector.broadcast %47 : vector<1x4x1xf32> to vector<2x4x256xf32>
    %50 = vector.broadcast %48 : vector<2x1x256xf32> to vector<2x4x256xf32>
    %51 = arith.mulf %49, %50 : vector<2x4x256xf32>
    %52 = arith.addf %44, %51 : vector<2x4x256xf32>
    %53 = vector.extract_strided_slice %23 {offsets = [3, 0, 0], sizes = [1, 4, 1], strides = [1, 1, 1]} : vector<4x4x1xf32> to vector<1x4x1xf32>
    %54 = vector.shape_cast %53 : vector<1x4x1xf32> to vector<4x1xf32>
    %55 = vector.shape_cast %54 : vector<4x1xf32> to vector<1x4x1xf32>
    %56 = vector.extract_strided_slice %17 {offsets = [0, 3, 0], sizes = [2, 1, 256], strides = [1, 1, 1]} : vector<2x4x256xf32> to vector<2x1x256xf32>
    %57 = vector.broadcast %55 : vector<1x4x1xf32> to vector<2x4x256xf32>
    %58 = vector.broadcast %56 : vector<2x1x256xf32> to vector<2x4x256xf32>
    %59 = arith.mulf %57, %58 : vector<2x4x256xf32>
    %60 = arith.addf %52, %59 : vector<2x4x256xf32>
    %61 = arith.subf %60, %22 : vector<2x4x256xf32>
    %62 = arith.mulf %61, %61 : vector<2x4x256xf32>
    %c0_23 = arith.constant 0 : index
    %c0_24 = arith.constant 0 : index
    %c0_25 = arith.constant 0 : index
    %63 = vector.load %arg6[%c0_23, %c0_24, %c0_25] : memref<2x1x1xf32, #tpu.memory_space<vmem>>, vector<2x1x1xf32>
    %64 = vector.broadcast %63 : vector<2x1x1xf32> to vector<2x4x256xf32>
    %65 = arith.mulf %62, %64 : vector<2x4x256xf32>
    %c0_26 = arith.constant 0 : index
    %c0_27 = arith.constant 0 : index
    %66 = vector.load %arg10[%c0_26, %c0_27] : memref<1x1xf32, #tpu.memory_space<vmem>>, vector<1x1xf32>
    %67 = vector.shape_cast %65 : vector<2x4x256xf32> to vector<1x2x4x256xf32>
    %cst_28 = arith.constant dense<0.000000e+00> : vector<1xf32>
    %68 = vector.multi_reduction <add>, %67, %cst_28 [1, 2, 3] : vector<1x2x4x256xf32> to vector<1xf32>
    %69 = vector.shape_cast %68 : vector<1xf32> to vector<1x1x1x1xf32>
    %70 = vector.extract %69[0, 0, 0, 0] : f32 from vector<1x1x1x1xf32>
    %71 = vector.broadcast %70 : f32 to vector<1x1xf32>
    %72 = arith.addf %66, %71 : vector<1x1xf32>
    %c0_29 = arith.constant 0 : index
    %c0_30 = arith.constant 0 : index
    %73 = vector.load %arg10[%c0_29, %c0_30] : memref<1x1xf32, #tpu.memory_space<vmem>>, vector<1x1xf32>
    tpu.vector_store %arg10[%c0_29, %c0_30], %72 {strides = array<i32>} : memref<1x1xf32, #tpu.memory_space<vmem>>, vector<1x1xf32>,
    %c0_i32_31 = arith.constant 0 : i32
    %74 = arith.cmpi eq, %arg0, %c0_i32_31 : i32
    %c0_i32_32 = arith.constant 0 : i32
    %75 = arith.cmpi eq, %arg1, %c0_i32_32 : i32
    %76 = arith.andi %74, %75 : i1
    %77 = arith.extui %76 : i1 to i32
    %c0_i32_33 = arith.constant 0 : i32
    %78 = arith.cmpi ne, %77, %c0_i32_33 : i32
    scf.if %78 {
      %c0_34 = arith.constant 0 : index
      %c0_35 = arith.constant 0 : index
      %79 = vector.load %arg10[%c0_34, %c0_35] : memref<1x1xf32, #tpu.memory_space<vmem>>, vector<1x1xf32>
      %cst_36 = arith.constant 4.8828125E-4 : f32
      %80 = vector.broadcast %cst_36 : f32 to vector<1x1xf32>
      %81 = arith.mulf %79, %80 : vector<1x1xf32>
      %c0_37 = arith.constant 0 : index
      %c0_38 = arith.constant 0 : index
      %82 = vector.load %arg10[%c0_37, %c0_38] : memref<1x1xf32, #tpu.memory_space<vmem>>, vector<1x1xf32>
      tpu.vector_store %arg10[%c0_37, %c0_38], %81 {strides = array<i32>} : memref<1x1xf32, #tpu.memory_space<vmem>>, vector<1x1xf32>,
    } else {
    }
    return
  }
  func.func @transform_0(%arg0: i32, %arg1: i32) -> (i32, i32, i32) {
    %c0_i32 = arith.constant 0 : i32
    %c0_i32_0 = arith.constant 0 : i32
    return %arg0, %c0_i32, %arg1 : i32, i32, i32
  }
  func.func @transform_1(%arg0: i32, %arg1: i32) -> (i32, i32, i32) {
    %c0_i32 = arith.constant 0 : i32
    %c0_i32_0 = arith.constant 0 : i32
    return %arg0, %c0_i32, %arg1 : i32, i32, i32
  }
  func.func @transform_2(%arg0: i32, %arg1: i32) -> (i32, i32, i32) {
    %c0_i32 = arith.constant 0 : i32
    %c0_i32_0 = arith.constant 0 : i32
    %c0_i32_1 = arith.constant 0 : i32
    return %arg0, %c0_i32, %c0_i32_0 : i32, i32, i32
  }
  func.func @transform_3(%arg0: i32, %arg1: i32) -> (i32, i32, i32) {
    %c0_i32 = arith.constant 0 : i32
    %c0_i32_0 = arith.constant 0 : i32
    %c0_i32_1 = arith.constant 0 : i32
    return %arg0, %c0_i32, %c0_i32_0 : i32, i32, i32
  }
  func.func @transform_4(%arg0: i32, %arg1: i32) -> (i32, i32, i32) {
    %c0_i32 = arith.constant 0 : i32
    %c0_i32_0 = arith.constant 0 : i32
    %c0_i32_1 = arith.constant 0 : i32
    return %arg0, %c0_i32, %c0_i32_0 : i32, i32, i32
  }
  func.func @transform_5(%arg0: i32, %arg1: i32) -> (i32, i32, i32) {
    %c0_i32 = arith.constant 0 : i32
    %c0_i32_0 = arith.constant 0 : i32
    %c0_i32_1 = arith.constant 0 : i32
    return %arg0, %c0_i32, %c0_i32_0 : i32, i32, i32
  }
  func.func @transform_6(%arg0: i32, %arg1: i32) -> (i32, i32, i32) {
    %c0_i32 = arith.constant 0 : i32
    %c0_i32_0 = arith.constant 0 : i32
    %c0_i32_1 = arith.constant 0 : i32
    %c0_i32_2 = arith.constant 0 : i32
    return %c0_i32, %c0_i32_0, %c0_i32_1 : i32, i32, i32
  }
  func.func @transform_7(%arg0: i32, %arg1: i32) -> (i32, i32, i32) {
    %c0_i32 = arith.constant 0 : i32
    %c0_i32_0 = arith.constant 0 : i32
    %c0_i32_1 = arith.constant 0 : i32
    %c0_i32_2 = arith.constant 0 : i32
    return %c0_i32, %c0_i32_0, %c0_i32_1 : i32, i32, i32
  }
  func.func @transform_8(%arg0: i32, %arg1: i32) -> (i32, i32) {
    %c0_i32 = arith.constant 0 : i32
    %c0_i32_0 = arith.constant 0 : i32
    %c0_i32_1 = arith.constant 0 : i32
    return %c0_i32, %c0_i32_0 : i32, i32
  }
}

</mosaic_0001>

<bundles_post_ra>
// kernel: tpu_custom_call.1
= control target key start
LH: loop header
LB: loop body
LE: loop exit
PB: predicated region body
PF: predicated region fallthrough
CT: control target
= control target key end

     0   :  { %v433_v2 = vmov 0   ;;  %s575_s0 = inlined_call_operand.vmem [shape: f32[2,4,256], index: 0, kind: input, shape index: {}]   ;;  %s576_s1 = inlined_call_operand.vmem [shape: f32[2,4,256], index: 1, kind: input, shape index: {}]   ;;  %s577_s2 = inlined_call_operand.vmem [shape: f32[2,1,1], index: 2, kind: input, shape index: {}]   ;;  %s578_s3 = inlined_call_operand.vmem [shape: f32[2,1,1], index: 3, kind: input, shape index: {}]   ;;  %s579_s4 = inlined_call_operand.vmem [shape: f32[2,1,1], index: 4, kind: input, shape index: {}]   ;;  %s580_s5 = inlined_call_operand.vmem [shape: f32[2,4,1], index: 5, kind: input, shape index: {}]   ;;  %s581_s6 = inlined_call_operand.vmem [shape: f32[4,4,1], index: 6, kind: input, shape index: {}]   ;;  %s582_s7 = inlined_call_operand.vmem [shape: f32[1,4,1], index: 7, kind: input, shape index: {}]   ;;  %s583_s8 = inlined_call_operand.hbm [shape: f32[1,1], index: 8, kind: output, shape index: {}]  }
   0x1   :  { %v397_v0 = vld [vmem:[%s577_s2 + $0x1] ss:$0 sm:$0xff]  ;;  %v396_v1 = vld [vmem:[%s577_s2] ss:$0 sm:$0xff]  ;;  %408 = vset.pattern.permute.xlu1 %v433_v2  ;;  %407 = vset.pattern.permute.xlu0 %v433_v2 }
   0x2   :  { %65 = vperm.xlu1 %408, %v397_v0   ;;  %61 = vperm.xlu0 %407, %v396_v1   ;;  %v399_v3 = vld [vmem:[%s578_s3 + $0x1] ss:$0 sm:$0xff]  ;;  %v398_v4 = vld [vmem:[%s578_s3] ss:$0 sm:$0xff] }
   0x3   :  { %v102_v5 = vld [vmem:[%s580_s5] sm:$0xf] }
   0x4   :  { %v104_v6 = vld [vmem:[%s582_s7] sm:$0xf] }
   0x5   :  { %13 = vsyncpa [#allocation3], 0  ;;  %v105_v7 = vadd.f32 %v104_v6, %v102_v5  ;;  %v98_v8 = vld [vmem:[%s581_s6] sm:$0xf]  ;;  %v103_v9 = vld [vmem:[%s580_s5 + $0x4] sm:$0xf]  ;;  %v114_v18 = vlaneseq }
   0x6   :  { %85 = vperm.xlu1 %408, %v399_v3   ;;  %81 = vperm.xlu0 %407, %v398_v4   ;;  %v106_v10 = vadd.f32 %v104_v6, %v103_v9  ;;  %v99_v11 = vld [vmem:[%s581_s6 + $0x4] sm:$0xf]  ;;  %v101_v12 = vld [vmem:[%s581_s6 + $0xc] sm:$0xf]  ;;  %v100_v13 = vld [vmem:[%s581_s6 + $0x8] sm:$0xf] }
   0x7   :  { %v401_v14 = vld [vmem:[%s579_s4 + $0x1] ss:$0 sm:$0xff]  ;;  %v400_v15 = vld [vmem:[%s579_s4] ss:$0 sm:$0xff]  ;;  %v39_v16 = vld [vmem:[%s575_s0 + $0x8] sm:$0xff]  ;;  %v526_v23 = vshrl.u32 %v114_v18, 7 }
   0x8   :  { %v38_v17 = vld [vmem:[%s575_s0] sm:$0xff]  ;;  %v41_v19 = vmul.f32 2.0, %v39_v16  ;;  %v45_v26 = vld [vmem:[%s576_s1 + $0x8] sm:$0xff]  ;;  %vm354_vm0 = vcmask 1043456   ;;  %vm36_vm1 = vcmask 0  }
   0x9   :  { %v40_v20 = vmul.f32 2.0, %v38_v17  ;;  %v44_v27 = vld [vmem:[%s576_s1] sm:$0xff]  ;;  %v116_v30 = vsub.s32 0, %v526_v23  ;;  %v120_v31 = vsub.s32 4, %v526_v23  ;;  %v175_v36 = vsub.s32 1, %v526_v23  ;;  %s435_s1 = smov [#allocation2]  }
   0xa   :  { %156 = vperm.xlu1 %408, %v105_v7   ;;  %109 = vperm.xlu0 %407, %v98_v8   ;;  %v395_v24 = vadd.f32 -1.0, %v41_v19  ;;  %v179_v37 = vsub.s32 5, %v526_v23  ;;  %v541_v41 = vsub.s32 3, %v526_v23  ;;  %v277_v42 = vsub.s32 7, %v526_v23  ;;  %s386_s11 = sshll.u32 %s435_s1, 4  ;;  %s387_s11 = int_to_ptr.vmem [resolvable:$true] %s386_s11 }
   0xb   :  { %v394_v25 = vadd.f32 -1.0, %v40_v20  ;;  %v224_v6 = vsub.s32 2, %v526_v23  ;;  %v228_v7 = vsub.s32 6, %v526_v23  ;;  %s409_s12 = scalar_lea.vmem %s387_s11, 16  ;;  %s413_s13 = scalar_lea.vmem %s387_s11, 32 }
   0xc   :  { %p410_p0 = scmp.ne.s32.totalorder %s387_s11, %s409_s12  ;;  %p414_p1 = scmp.lt.s32.totalorder %s387_s11, %s387_s11 }
   0xd   :  { %p415_p2 = scmp.lt.s32.totalorder %s413_s13, %s409_s12 }
   0xe   :  { %161 = vperm.xlu1 %408, %v106_v10   ;;  %170 = vperm.xlu0 %407, %v99_v11  }
   0xf   :  { %p416_p3 = por %p415_p2, %p414_p1 }
  0x11   :  { %p417_p4 = pnand %p416_p3, %p410_p0 }
  0x12   :  { %268 = vperm.xlu1 %408, %v101_v12   ;;  %219 = vperm.xlu0 %407, %v100_v13  }
  0x16   :  { %346 = vperm.xlu1 %408, %v401_v14   ;;  %342 = vperm.xlu0 %407, %v400_v15  }
  0x81   :  { %v66_v21 = vpop.permute.xlu1 %65  ;;  %v62_v22 = vpop.permute.xlu0 %61 }
  0x82   :  { %v69_v32 = vmul.f32 %v395_v24, %v66_v21  ;;  %v68_v33 = vmul.f32 %v394_v25, %v62_v22  ;;  %v93_v0 = vmul.f32 %v66_v21, %v45_v26  ;;  %v92_v1 = vmul.f32 %v62_v22, %v44_v27 }
  0x85   :  { %v86_v28 = vpop.permute.xlu1 %85  ;;  %v82_v29 = vpop.permute.xlu0 %81 }
  0x86   :  { %v89_v34 = vmul.f32 %v86_v28, %v45_v26  ;;  %v88_v35 = vmul.f32 %v82_v29, %v44_v27  ;;  %v95_v43 = vmul.f32 %v395_v24, %v86_v28  ;;  %v94_v56 = vmul.f32 %v394_v25, %v82_v29 }
  0x88   :  { %v538_v38 = vadd.f32 %v89_v34, %v69_v32  ;;  %v90_v39 = vadd.f32 %v88_v35, %v68_v33  ;;  %v97_v8 = vsub.f32 %v93_v0, %v95_v43  ;;  %v96_v9 = vsub.f32 %v92_v1, %v94_v56 }
  0x89   :  { %v110_v40 = vpop.permute.xlu0 %109  ;;  %v157_v44 = vpop.permute.xlu1 %156 }
  0x8a   :  { %v117_v45 = vrot.slane %v90_v39, %v116_v30  ;;  %v121_v46 = vrot.slane %v90_v39, %v120_v31  ;;  %v125_v47 = vrot.slane %v538_v38, %v116_v30  ;;  %v129_v48 = vrot.slane %v538_v38, %v120_v31 }
  0x8b   :  { %v176_v49 = vrot.slane %v90_v39, %v175_v36  ;;  %v180_v50 = vrot.slane %v90_v39, %v179_v37  ;;  %v184_v51 = vrot.slane %v538_v38, %v175_v36  ;;  %v188_v55 = vrot.slane %v538_v38, %v179_v37 }
  0x8c   :  { %v137_v52 = vrot.slane %v117_v45, %v116_v30  ;;  %v141_v53 = vrot.slane %v121_v46, %v116_v30  ;;  %v145_v54 = vrot.slane %v125_v47, %v116_v30  ;;  %v149_v57 = vrot.slane %v129_v48, %v116_v30 }
  0x8d   :  { %v196_v58 = vrot.slane %v176_v49, %v175_v36  ;;  %v200_v59 = vrot.slane %v180_v50, %v175_v36  ;;  %v204_v63 = vrot.slane %v184_v51, %v175_v36  ;;  %v171_v3 = vpop.permute.xlu0 %170  ;;  %v208_v4 = vrot.slane %v188_v55, %v175_v36  ;;  %v162_v5 = vpop.permute.xlu1 %161 }
  0x8e   :  { %v150_v60 = vmul.f32 %v137_v52, %v110_v40  ;;  %v151_v61 = vmul.f32 %v141_v53, %v110_v40  ;;  %v152_v62 = vmul.f32 %v145_v54, %v110_v40  ;;  %v153_v2 = vmul.f32 %v149_v57, %v110_v40 }
  0x8f   :  { %v209_v13 = vmul.f32 %v196_v58, %v171_v3  ;;  %v210_v14 = vmul.f32 %v200_v59, %v171_v3  ;;  %v211_v15 = vmul.f32 %v204_v63, %v171_v3  ;;  %v212_v17 = vmul.f32 %v208_v4, %v171_v3 }
  0x90   :  { %v164_v10 = vadd.f32 %v157_v44, %v150_v60  ;;  %v165_v11 = vadd.f32 %v157_v44, %v151_v61  ;;  %v166_v12 = vadd.f32 %v162_v5, %v152_v62  ;;  %v167_v16 = vadd.f32 %v162_v5, %v153_v2 }
  0x91   :  { %v274_v18 = vrot.slane %v90_v39, %v541_v41  ;;  %v278_v19 = vrot.slane %v90_v39, %v277_v42  ;;  %v282_v20 = vrot.slane %v538_v38, %v541_v41  ;;  %v225_v21 = vrot.slane %v90_v39, %v224_v6  ;;  %v220_v27 = vpop.permute.xlu0 %219  ;;  %v269_v30 = vpop.permute.xlu1 %268 }
  0x92   :  { %v229_v22 = vrot.slane %v90_v39, %v228_v7  ;;  %v233_v23 = vrot.slane %v538_v38, %v224_v6  ;;  %v213_v24 = vadd.f32 %v209_v13, %v164_v10  ;;  %v214_v25 = vadd.f32 %v210_v14, %v165_v11 }
  0x93   :  { %v286_v26 = vrot.slane %v538_v38, %v277_v42  ;;  %v237_v28 = vrot.slane %v538_v38, %v228_v7  ;;  %v215_v29 = vadd.f32 %v211_v15, %v166_v12  ;;  %v245_v31 = vrot.slane %v225_v21, %v224_v6 }
  0x94   :  { %v249_v32 = vrot.slane %v229_v22, %v224_v6  ;;  %v253_v33 = vrot.slane %v233_v23, %v224_v6  ;;  %v216_v34 = vadd.f32 %v212_v17, %v167_v16  ;;  %v294_v35 = vrot.slane %v274_v18, %v541_v41 }
  0x95   :  { %v298_v36 = vrot.slane %v278_v19, %v541_v41  ;;  %v257_v37 = vrot.slane %v237_v28, %v224_v6  ;;  %v302_v39 = vrot.slane %v282_v20, %v541_v41  ;;  %v258_v40 = vmul.f32 %v245_v31, %v220_v27  ;;  %v347_v1 = vpop.permute.xlu1 %346  ;;  %v343_v3 = vpop.permute.xlu0 %342 }
  0x96   :  { %v259_v43 = vmul.f32 %v249_v32, %v220_v27  ;;  %v260_v44 = vmul.f32 %v253_v33, %v220_v27  ;;  %v306_v42 = vrot.slane %v286_v26, %v541_v41  ;;  %v307_v45 = vmul.f32 %v294_v35, %v269_v30 }
  0x97   :  { %v308_v38 = vmul.f32 %v298_v36, %v269_v30  ;;  %v261_v46 = vmul.f32 %v257_v37, %v220_v27  ;;  %v309_v47 = vmul.f32 %v302_v39, %v269_v30  ;;  %v262_v48 = vadd.f32 %v258_v40, %v213_v24 }
  0x98   :  { %v263_v49 = vadd.f32 %v259_v43, %v214_v25  ;;  %v264_v50 = vadd.f32 %v260_v44, %v215_v29  ;;  %v310_v51 = vmul.f32 %v306_v42, %v269_v30  ;;  %v317_v53 = vcombine.high %v96_v9, %v96_v9 }
  0x99   :  { %v265_v52 = vadd.f32 %v261_v46, %v216_v34  ;;  %v311_v55 = vadd.f32 %v307_v45, %v262_v48  ;;  %v318_v58 = vcombine.high %v97_v8, %v97_v8  ;;  %v434_v15 = vmov 0.0  }
  0x9a   :  { %v313_v54 = vadd.f32 %v309_v47, %v264_v50  ;;  %v312_v56 = vadd.f32 %v308_v38, %v263_v49  ;;  %37 = vst.msk [vmem:[#allocation2] sm:$0x1] %vm36_vm1, %v434_v15 }
  0x9b   :  { %v314_v57 = vadd.f32 %v310_v51, %v265_v52  ;;  %v321_v60 = vsub.f32 %v311_v55, %v96_v9 }
  0x9c   :  { %v323_v59 = vsub.f32 %v313_v54, %v97_v8  ;;  %v322_v61 = vsub.f32 %v312_v56, %v317_v53 }
  0x9d   :  { %v324_v62 = vsub.f32 %v314_v57, %v318_v58  ;;  %v325_v63 = vmul.f32 %v321_v60, %v321_v60 }
  0x9e   :  { %v327_v41 = vmul.f32 %v323_v59, %v323_v59  ;;  %v326_v0 = vmul.f32 %v322_v61, %v322_v61 }
  0x9f   :  { %v328_v2 = vmul.f32 %v324_v62, %v324_v62  ;;  %v349_v5 = vmul.f32 %v343_v3, %v325_v63 }
  0xa0   :  { %v351_v4 = vmul.f32 %v347_v1, %v327_v41  ;;  %v350_v6 = vmul.f32 %v343_v3, %v326_v0 }
  0xa1   :  { %v352_v7 = vmul.f32 %v347_v1, %v328_v2  ;;  %v355_v10 = vsel %vm354_vm0, %v349_v5, 0.0  ;;  %v353_v23 = vld [vmem:[#allocation2] sm:$0x1] }
  0xa2   :  { %v356_v11 = vsel %vm354_vm0, %v350_v6, 0.0  ;;  %v358_v13 = vsel %vm354_vm0, %v351_v4, 0.0 }
  0xa3   :  { %v357_v12 = vadd.f32 %v356_v11, %v355_v10  ;;  %v360_v8 = vsel %vm354_vm0, %v352_v7, 0.0 }
  0xa5   :  { %v359_v14 = vadd.f32 %v358_v13, %v357_v12 }
  0xa7   :  { %v361_v9 = vadd.f32 %v360_v8, %v359_v14 }
  0xa9   :  { %362 = vadd.xlane.f32.xlu0 %v361_v9 }
 0x136   :  { %v363_v16 = vpop.xlane.xlu0 %362 }
 0x137   :  { %v364_v17 = vrot.slane %v363_v16, 4 }
 0x139   :  { %v365_v18 = vadd.f32 %v364_v17, %v363_v16 }
 0x13b   :  { %v366_v19 = vrot.slane %v365_v18, 2 }
 0x13d   :  { %v367_v20 = vadd.f32 %v366_v19, %v365_v18 }
 0x13f   :  { %v368_v21 = vrot.slane %v367_v20, 1 }
 0x141   :  { %v369_v22 = vadd.f32 %v368_v21, %v367_v20 }
 0x143   :  { %402 = vpush %v369_v22 }
 0x174   :  { %s403_s0 = spop %402 }
 0x175   :  { %v371_v24 = vstv %s403_s0 }
 0x176   :  { %v372_v25 = vadd.f32 %v371_v24, %v353_v23 }
 0x178   :  { %374 = vst.msk [vmem:[#allocation2] sm:$0x1] %vm36_vm1, %v372_v25 }
 0x17f   :  { %v377_v26 = vld [vmem:[#allocation2] sm:$0x1] }
 0x180   :  { %v378_v27 = vmul.f32 0.00048828125, %v377_v26 }
 0x182   :  { %379 = vst.msk [vmem:[#allocation2] sm:$0x1] %vm36_vm1, %v378_v27 }
 0x183   :  { %420 = shalt.err (!%p417_p4)
}
 0x184   :  { %s421_s16 = scalar_lea.hbm %s583_s8, 16 }
 0x185   :  { %p422_p5 = scmp.ne.s32.totalorder %s583_s8, %s421_s16  ;;  %p425_p6 = scmp.lt.u32.totalorder %s421_s16, %s583_s8 }
 0x187   :  { %p427_p7 = pnand %p425_p6, %p422_p5 }
 0x189   :  { %430 = shalt.err (!%p427_p7)
}
 0x18a   :  { %389 = dma.vmem_to_hbm [thread:$0]  %s387_s11, 16, %s583_s8, [#allocation3]  }
 0x18b   :  { %431 = dma.done.wait [#allocation3], 16  }
 0x18c   :  { %432 = vsyncadd [#allocation3], 4294967280 }
 0x18d   :  { %393 = vsyncpa [#allocation3], 1 }

</bundles_post_ra>
